<compile_context>
chip_gen: v7x
topology: tpu7x:2x2x1
jax: 0.10.0
libtpu: 0.0.40
codegen_flags: <defaults>
</compile_context>

<pallas_src>
import functools

import jax
import jax.numpy as jnp
from jax.experimental import pallas as pl
from jax.experimental.pallas import tpu as pltpu


def _round_up(x, m):
    return ((x + m - 1) // m) * m


# ----------------------------------------------------------------------------
# Fused kernel: one grid step per stream, whole batch inside the block.
#   y1 = relu(conv1(x)*s1 + b1)          (s1 folded into wb1)
#   y  = relu(conv2(y1)*s2 + b2 + x)     (s2 folded into wb2)
# Each 3x3 conv = 3 accumulating matmuls (one per kernel row) against banded
# (LANES x LANES) weights; activations live in the shifted "padded pixel" lane
# layout, so halo handling is just two zero rows per image.
# ----------------------------------------------------------------------------
def _fused_block_kernel(x_ref, wb1_ref, wb2_ref, b1_ref, b2_ref, o_ref,
                        xp_ref, y1p_ref, *, B, H, LANES):
    x = x_ref[0]                                           # (B, H, LANES) f32
    zrow = jnp.zeros((B, 1, LANES), jnp.float32)

    # ---- padded copy of x in VMEM: halo rows zero, interior = x (full lanes)
    xp_ref[:, 0:1, :] = zrow
    xp_ref[:, H + 1:H + 2, :] = zrow
    xp_ref[:, 1:H + 1, :] = x

    # ---- conv1 (+ folded BN1) + ReLU: 3 accumulating MXU dots ---------------
    acc1 = jnp.zeros((B * H, LANES), jnp.float32)
    for kh in range(3):
        rows = xp_ref[:, kh:kh + H, :].reshape(B * H, LANES)
        acc1 = acc1 + jnp.dot(rows.astype(jnp.bfloat16), wb1_ref[0, kh],
                              preferred_element_type=jnp.float32)
    y1 = jnp.maximum(acc1 + b1_ref[0], 0.0)                # (B*H, LANES) f32
    # y1 is already in the shifted/padded lane layout (halo lanes are zero by
    # construction of the banded weights / padded bias + relu(0)=0).

    # ---- padded copy of y1 in VMEM (never leaves VMEM) ----------------------
    y1p_ref[:, 0:1, :] = zrow
    y1p_ref[:, H + 1:H + 2, :] = zrow
    y1p_ref[:, 1:H + 1, :] = y1.reshape(B, H, LANES)

    # ---- conv2 (+ folded BN2) + residual + ReLU -----------------------------
    acc2 = jnp.zeros((B * H, LANES), jnp.float32)
    for kh in range(3):
        rows = y1p_ref[:, kh:kh + H, :].reshape(B * H, LANES)
        acc2 = acc2 + jnp.dot(rows.astype(jnp.bfloat16), wb2_ref[0, kh],
                              preferred_element_type=jnp.float32)
    y2 = acc2 + b2_ref[0] + x.reshape(B * H, LANES)        # Cin == Cout
    o_ref[0] = jnp.maximum(y2, 0.0).reshape(B, H, LANES)


# ----------------------------------------------------------------------------
# Parameter preprocessing (hoisted out of the per-call path).
# ----------------------------------------------------------------------------
def _fold_bn(gamma, beta, mean, var, eps=1e-5):
    """Eval-mode BatchNorm -> per-channel (scale, bias)."""
    scale = gamma / jnp.sqrt(var + eps)
    bias = beta - mean * scale
    return scale, bias


def _banded_conv_weight(w_hwio, scale, W, LANES):
    """3x3 HWIO weight (BN scale folded) -> (3, LANES, LANES) bf16 banded.

    Row index    = p*Cin + ci   (p = padded input pixel coord, 0..W+1)
    Column index = q*Cout + co  (q = w+1, padded output pixel coord, 1..W)
    M_kh[p*Cin+ci, q*Cout+co] = w[kh, kw, ci, co] * scale[co] with p = q-1+kw,
    so conv3x3(x)[h, w, co] = sum_kh xpad_flat[h+kh, :] @ M_kh, already in the
    shifted (padded pixel) output lane layout.
    """
    Cin, Cout = w_hwio.shape[2], w_hwio.shape[3]
    wf = (w_hwio * scale[None, None, None, :]).astype(jnp.float32)
    col_mask = jnp.zeros((W + 2,), jnp.float32).at[1:W + 1].set(1.0)
    mats = []
    for kh in range(3):
        m = jnp.zeros(((W + 2) * Cin, (W + 2) * Cout), jnp.float32)
        for kw in range(3):
            # sel[p, q] = 1  iff  p = (q - 1) + kw,  restricted to q in 1..W
            sel = jnp.eye(W + 2, W + 2, k=1 - kw, dtype=jnp.float32)
            sel = sel * col_mask[None, :]
            m = m + jnp.einsum("pq,ic->piqc", sel, wf[kh, kw]).reshape(
                (W + 2) * Cin, (W + 2) * Cout)
        m = jnp.pad(m, ((0, LANES - (W + 2) * Cin), (0, LANES - (W + 2) * Cout)))
        mats.append(m)
    return jnp.stack(mats, axis=0).astype(jnp.bfloat16)


def _pad_bias(bias, W, LANES):
    """Per-channel bias -> (1, LANES) f32 row in the shifted output layout."""
    Cout = bias.shape[0]
    row = jnp.pad(jnp.tile(bias, W), (Cout, LANES - (W + 1) * Cout))
    return row.reshape(1, LANES).astype(jnp.float32)


def prepare_block_params(params, W):
    """Build the banded weights / padded biases ONCE (model-load time)."""
    Cin, Cout = params["w1_c"].shape[2], params["w1_c"].shape[3]
    assert Cin == Cout, "stride=1 / downsample=None path requires Cin == Cout"
    LANES = _round_up((W + 2) * max(Cin, Cout), 128)

    def prep(w, bn):
        scale, bias = _fold_bn(*bn)
        return _banded_conv_weight(w, scale, W, LANES), _pad_bias(bias, W, LANES)

    wb1_c, b1_c = prep(params["w1_c"], params["bn1_c"])
    wb2_c, b2_c = prep(params["w2_c"], params["bn2_c"])
    wb1_b, b1_b = prep(params["w1_b"], params["bn1_b"])
    wb2_b, b2_b = prep(params["w2_b"], params["bn2_b"])

    return {
        "wb1": jnp.stack([wb1_c, wb1_b], axis=0),    # (S, 3, LANES, LANES) bf16
        "wb2": jnp.stack([wb2_c, wb2_b], axis=0),
        "b1": jnp.stack([b1_c, b1_b], axis=0),       # (S, 1, LANES) f32
        "b2": jnp.stack([b2_c, b2_b], axis=0),
    }


# ----------------------------------------------------------------------------
# Forward: both streams in ONE pallas_call, grid = (stream,), "parallel".
# ----------------------------------------------------------------------------
@jax.jit
def multichannel_resnet_basic_block(color_x, bright_x, prepared):
    xs = jnp.stack([color_x, bright_x], axis=0).astype(jnp.float32)  # (S,B,C,H,W)
    S, B, C, H, W = xs.shape
    wb1, wb2 = prepared["wb1"], prepared["wb2"]
    b1, b2 = prepared["b1"], prepared["b2"]
    LANES = wb1.shape[-1]
    assert (W + 2) * C <= LANES and wb1.shape == (S, 3, LANES, LANES)

    # NCHW -> NHWC -> (S,B,H,W*C) -> shifted padded-pixel lane layout (…,LANES)
    x_flat = jnp.transpose(xs, (0, 1, 3, 4, 2)).reshape(S, B, H, W * C)
    x_pad = jnp.pad(x_flat, ((0, 0), (0, 0), (0, 0), (C, LANES - (W + 1) * C)))

    kernel = functools.partial(_fused_block_kernel, B=B, H=H, LANES=LANES)
    out_pad = pl.pallas_call(
        kernel,
        out_shape=jax.ShapeDtypeStruct((S, B, H, LANES), jnp.float32),
        grid=(S,),
        in_specs=[
            pl.BlockSpec((1, B, H, LANES), lambda s: (s, 0, 0, 0)),
            pl.BlockSpec((1, 3, LANES, LANES), lambda s: (s, 0, 0, 0)),
            pl.BlockSpec((1, 3, LANES, LANES), lambda s: (s, 0, 0, 0)),
            pl.BlockSpec((1, 1, LANES), lambda s: (s, 0, 0)),
            pl.BlockSpec((1, 1, LANES), lambda s: (s, 0, 0)),
        ],
        out_specs=pl.BlockSpec((1, B, H, LANES), lambda s: (s, 0, 0, 0)),
        scratch_shapes=[
            pltpu.VMEM((B, H + 2, LANES), jnp.float32),   # padded x
            pltpu.VMEM((B, H + 2, LANES), jnp.float32),   # padded y1
        ],
        compiler_params=pltpu.CompilerParams(
            dimension_semantics=("parallel",)),
    )(x_pad, wb1, wb2, b1, b2)

    out = out_pad[..., C:C + W * C].reshape(S, B, H, W, C)
    out = jnp.transpose(out, (0, 1, 4, 2, 3))                  # NHWC -> NCHW
    return out[0], out[1]


# ----------------------------------------------------------------------------
# Pure-JAX reference (same numerics: bf16 MXU inputs, f32 accumulation)
# ----------------------------------------------------------------------------
def _ref_stream(x_nchw, w1, bn1, w2, bn2):
    x = jnp.transpose(x_nchw, (0, 2, 3, 1)).astype(jnp.float32)
    dn = ("NHWC", "HWIO", "NHWC")
    s1, b1 = _fold_bn(*bn1)
    s2, b2 = _fold_bn(*bn2)
    w1f = (w1 * s1[None, None, None, :]).astype(jnp.bfloat16)
    w2f = (w2 * s2[None, None, None, :]).astype(jnp.bfloat16)

    def conv(a, wgt):
        return jax.lax.conv_general_dilated(
            a.astype(jnp.bfloat16), wgt, (1, 1), "SAME",
            dimension_numbers=dn, preferred_element_type=jnp.float32)

    y = jnp.maximum(conv(x, w1f) + b1, 0.0)
    y = jnp.maximum(conv(y, w2f) + b2 + x, 0.0)
    return jnp.transpose(y, (0, 3, 1, 2))


# ----------------------------------------------------------------------------
# Deterministic parameter init + driver
# ----------------------------------------------------------------------------
def _make_params(key, c_in, c_out):
    ks = jax.random.split(key, 12)

    def conv_w(k):
        return jax.random.normal(k, (3, 3, c_in, c_out), jnp.float32) * 0.1

    def bn_params(kg, kb, km, kv):
        gamma = 1.0 + 0.1 * jax.random.normal(kg, (c_out,), jnp.float32)
        beta = 0.1 * jax.random.normal(kb, (c_out,), jnp.float32)
        mean = 0.1 * jax.random.normal(km, (c_out,), jnp.float32)
        var = jnp.abs(jax.random.normal(kv, (c_out,), jnp.float32)) + 0.5
        return (gamma, beta, mean, var)

    return {
        "w1_c": conv_w(ks[0]), "w2_c": conv_w(ks[1]),
        "w1_b": conv_w(ks[2]), "w2_b": conv_w(ks[3]),
        "bn1_c": bn_params(ks[4], ks[5], ks[6], ks[7]),
        "bn2_c": bn_params(ks[8], ks[9], ks[10], ks[11]),
        "bn1_b": bn_params(ks[7], ks[6], ks[5], ks[4]),
        "bn2_b": bn_params(ks[11], ks[10], ks[9], ks[8]),
    }


if __name__ == "__main__":
    key = jax.random.PRNGKey(0)
    k_c, k_b, k_p = jax.random.split(key, 3)

    B, C, H, W = 2, 4, 16, 16          # in_channels == out_channels, stride=1
    color_x = jax.random.normal(k_c, (B, C, H, W), jnp.float32)
    bright_x = jax.random.normal(k_b, (B, C, H, W), jnp.float32)
    params = _make_params(k_p, C, C)

    # Preprocessing hoisted out of the per-call path (runs once).
    prepared = prepare_block_params(params, W)

    color_out, bright_out = multichannel_resnet_basic_block(
        color_x, bright_x, prepared)
    color_out = jax.block_until_ready(color_out)
    bright_out = jax.block_until_ready(bright_out)

    ref_c = _ref_stream(color_x, params["w1_c"], params["bn1_c"],
                        params["w2_c"], params["bn2_c"])
    ref_b = _ref_stream(bright_x, params["w1_b"], params["bn1_b"],
                        params["w2_b"], params["bn2_b"])
    assert color_out.shape == (B, C, H, W) and bright_out.shape == (B, C, H, W)
    # bf16 MXU inputs / f32 accumulation in both kernel and reference; tolerance
    # covers accumulation-order differences and bf16 rounding of the y1 cast.
    assert jnp.allclose(color_out, ref_c, atol=2e-2, rtol=2e-2)
    assert jnp.allclose(bright_out, ref_b, atol=2e-2, rtol=2e-2)

    print("KERNEL_OK")
</pallas_src>

<mosaic_0001>
module attributes {stable_mosaic.version = 11 : i64} {
  func.func @_fused_block_kernel(%arg0: i32, %arg1: memref<1x2x16x128xf32, #tpu.memory_space<vmem>>, %arg2: memref<1x3x128x128xbf16, #tpu.memory_space<vmem>>, %arg3: memref<1x3x128x128xbf16, #tpu.memory_space<vmem>>, %arg4: memref<1x1x128xf32, #tpu.memory_space<vmem>>, %arg5: memref<1x1x128xf32, #tpu.memory_space<vmem>>, %arg6: memref<1x2x16x128xf32, #tpu.memory_space<vmem>>, %arg7: memref<2x18x128xf32, #tpu.memory_space<vmem>>, %arg8: memref<2x18x128xf32, #tpu.memory_space<vmem>>) attributes {dimension_semantics = [#tpu.dimension_semantics<parallel>], iteration_bounds = array<i64: 2>, scalar_prefetch = 0 : i64, scratch_operands = 2 : i64, tpu.core_type = #tpu.core_type<tc>, window_params = [{transform_indices = @transform_0, window_bounds = array<i64: 1, 2, 16, 128>}, {transform_indices = @transform_1, window_bounds = array<i64: 1, 3, 128, 128>}, {transform_indices = @transform_2, window_bounds = array<i64: 1, 3, 128, 128>}, {transform_indices = @transform_3, window_bounds = array<i64: 1, 1, 128>}, {transform_indices = @transform_4, window_bounds = array<i64: 1, 1, 128>}, {transform_indices = @transform_5, window_bounds = array<i64: 1, 2, 16, 128>}]} {
    %c0 = arith.constant 0 : index
    %c0_0 = arith.constant 0 : index
    %c0_1 = arith.constant 0 : index
    %c0_2 = arith.constant 0 : index
    %0 = vector.load %arg1[%c0, %c0_0, %c0_1, %c0_2] : memref<1x2x16x128xf32, #tpu.memory_space<vmem>>, vector<1x2x16x128xf32>
    %1 = vector.shape_cast %0 : vector<1x2x16x128xf32> to vector<2x16x128xf32>
    %cst = arith.constant 0.000000e+00 : f32
    %2 = vector.broadcast %cst : f32 to vector<2x1x128xf32>
    %c0_3 = arith.constant 0 : index
    %c0_4 = arith.constant 0 : index
    %c0_5 = arith.constant 0 : index
    %3 = vector.load %arg7[%c0_3, %c0_4, %c0_5] : memref<2x18x128xf32, #tpu.memory_space<vmem>>, vector<2x1x128xf32>
    tpu.vector_store %arg7[%c0_3, %c0_4, %c0_5], %2 {strides = array<i32>} : memref<2x18x128xf32, #tpu.memory_space<vmem>>, vector<2x1x128xf32>,
    %c0_6 = arith.constant 0 : index
    %c17 = arith.constant 17 : index
    %c0_7 = arith.constant 0 : index
    %4 = vector.load %arg7[%c0_6, %c17, %c0_7] : memref<2x18x128xf32, #tpu.memory_space<vmem>>, vector<2x1x128xf32>
    tpu.vector_store %arg7[%c0_6, %c17, %c0_7], %2 {strides = array<i32>} : memref<2x18x128xf32, #tpu.memory_space<vmem>>, vector<2x1x128xf32>,
    %c0_8 = arith.constant 0 : index
    %c1 = arith.constant 1 : index
    %c0_9 = arith.constant 0 : index
    %5 = vector.load %arg7[%c0_8, %c1, %c0_9] : memref<2x18x128xf32, #tpu.memory_space<vmem>>, vector<2x16x128xf32>
    tpu.vector_store %arg7[%c0_8, %c1, %c0_9], %1 {strides = array<i32>} : memref<2x18x128xf32, #tpu.memory_space<vmem>>, vector<2x16x128xf32>,
    %cst_10 = arith.constant 0.000000e+00 : f32
    %6 = vector.broadcast %cst_10 : f32 to vector<32x128xf32>
    %c0_11 = arith.constant 0 : index
    %c0_12 = arith.constant 0 : index
    %c0_13 = arith.constant 0 : index
    %7 = vector.load %arg7[%c0_11, %c0_12, %c0_13] : memref<2x18x128xf32, #tpu.memory_space<vmem>>, vector<2x16x128xf32>
    %8 = vector.shape_cast %7 : vector<2x16x128xf32> to vector<32x128xf32>
    %9 = arith.truncf %8 : vector<32x128xf32> to vector<32x128xbf16>
    %c0_14 = arith.constant 0 : index
    %c0_15 = arith.constant 0 : index
    %c0_16 = arith.constant 0 : index
    %c0_17 = arith.constant 0 : index
    %10 = vector.load %arg2[%c0_14, %c0_15, %c0_16, %c0_17] : memref<1x3x128x128xbf16, #tpu.memory_space<vmem>>, vector<1x1x128x128xbf16>
    %11 = vector.shape_cast %10 : vector<1x1x128x128xbf16> to vector<128x128xbf16>
    %cst_18 = arith.constant dense<0.000000e+00> : vector<32x128xf32>
    %12 = tpu.matmul %9, %11, %cst_18 {dimension_numbers = #tpu.dot_dimension_numbers<[1], [0], [0], [1], [0, 0, 1, 1], [], []>} : vector<32x128xbf16>, vector<128x128xbf16>, vector<32x128xf32> -> vector<32x128xf32>
    %13 = arith.addf %6, %12 : vector<32x128xf32>
    %c0_19 = arith.constant 0 : index
    %c1_20 = arith.constant 1 : index
    %c0_21 = arith.constant 0 : index
    %14 = vector.load %arg7[%c0_19, %c1_20, %c0_21] : memref<2x18x128xf32, #tpu.memory_space<vmem>>, vector<2x16x128xf32>
    %15 = vector.shape_cast %14 : vector<2x16x128xf32> to vector<32x128xf32>
    %16 = arith.truncf %15 : vector<32x128xf32> to vector<32x128xbf16>
    %c0_22 = arith.constant 0 : index
    %c1_23 = arith.constant 1 : index
    %c0_24 = arith.constant 0 : index
    %c0_25 = arith.constant 0 : index
    %17 = vector.load %arg2[%c0_22, %c1_23, %c0_24, %c0_25] : memref<1x3x128x128xbf16, #tpu.memory_space<vmem>>, vector<1x1x128x128xbf16>
    %18 = vector.shape_cast %17 : vector<1x1x128x128xbf16> to vector<128x128xbf16>
    %cst_26 = arith.constant dense<0.000000e+00> : vector<32x128xf32>
    %19 = tpu.matmul %16, %18, %cst_26 {dimension_numbers = #tpu.dot_dimension_numbers<[1], [0], [0], [1], [0, 0, 1, 1], [], []>} : vector<32x128xbf16>, vector<128x128xbf16>, vector<32x128xf32> -> vector<32x128xf32>
    %20 = arith.addf %13, %19 : vector<32x128xf32>
    %c0_27 = arith.constant 0 : index
    %c2 = arith.constant 2 : index
    %c0_28 = arith.constant 0 : index
    %21 = vector.load %arg7[%c0_27, %c2, %c0_28] : memref<2x18x128xf32, #tpu.memory_space<vmem>>, vector<2x16x128xf32>
    %22 = vector.shape_cast %21 : vector<2x16x128xf32> to vector<32x128xf32>
    %23 = arith.truncf %22 : vector<32x128xf32> to vector<32x128xbf16>
    %c0_29 = arith.constant 0 : index
    %c2_30 = arith.constant 2 : index
    %c0_31 = arith.constant 0 : index
    %c0_32 = arith.constant 0 : index
    %24 = vector.load %arg2[%c0_29, %c2_30, %c0_31, %c0_32] : memref<1x3x128x128xbf16, #tpu.memory_space<vmem>>, vector<1x1x128x128xbf16>
    %25 = vector.shape_cast %24 : vector<1x1x128x128xbf16> to vector<128x128xbf16>
    %cst_33 = arith.constant dense<0.000000e+00> : vector<32x128xf32>
    %26 = tpu.matmul %23, %25, %cst_33 {dimension_numbers = #tpu.dot_dimension_numbers<[1], [0], [0], [1], [0, 0, 1, 1], [], []>} : vector<32x128xbf16>, vector<128x128xbf16>, vector<32x128xf32> -> vector<32x128xf32>
    %27 = arith.addf %20, %26 : vector<32x128xf32>
    %c0_34 = arith.constant 0 : index
    %c0_35 = arith.constant 0 : index
    %c0_36 = arith.constant 0 : index
    %28 = vector.load %arg4[%c0_34, %c0_35, %c0_36] : memref<1x1x128xf32, #tpu.memory_space<vmem>>, vector<1x1x128xf32>
    %29 = vector.shape_cast %28 : vector<1x1x128xf32> to vector<1x128xf32>
    %30 = vector.broadcast %29 : vector<1x128xf32> to vector<32x128xf32>
    %31 = arith.addf %27, %30 : vector<32x128xf32>
    %cst_37 = arith.constant 0.000000e+00 : f32
    %32 = vector.broadcast %cst_37 : f32 to vector<32x128xf32>
    %33 = arith.maximumf %31, %32 : vector<32x128xf32>
    %c0_38 = arith.constant 0 : index
    %c0_39 = arith.constant 0 : index
    %c0_40 = arith.constant 0 : index
    %34 = vector.load %arg8[%c0_38, %c0_39, %c0_40] : memref<2x18x128xf32, #tpu.memory_space<vmem>>, vector<2x1x128xf32>
    tpu.vector_store %arg8[%c0_38, %c0_39, %c0_40], %2 {strides = array<i32>} : memref<2x18x128xf32, #tpu.memory_space<vmem>>, vector<2x1x128xf32>,
    %c0_41 = arith.constant 0 : index
    %c17_42 = arith.constant 17 : index
    %c0_43 = arith.constant 0 : index
    %35 = vector.load %arg8[%c0_41, %c17_42, %c0_43] : memref<2x18x128xf32, #tpu.memory_space<vmem>>, vector<2x1x128xf32>
    tpu.vector_store %arg8[%c0_41, %c17_42, %c0_43], %2 {strides = array<i32>} : memref<2x18x128xf32, #tpu.memory_space<vmem>>, vector<2x1x128xf32>,
    %36 = vector.shape_cast %33 : vector<32x128xf32> to vector<2x16x128xf32>
    %c0_44 = arith.constant 0 : index
    %c1_45 = arith.constant 1 : index
    %c0_46 = arith.constant 0 : index
    %37 = vector.load %arg8[%c0_44, %c1_45, %c0_46] : memref<2x18x128xf32, #tpu.memory_space<vmem>>, vector<2x16x128xf32>
    tpu.vector_store %arg8[%c0_44, %c1_45, %c0_46], %36 {strides = array<i32>} : memref<2x18x128xf32, #tpu.memory_space<vmem>>, vector<2x16x128xf32>,
    %cst_47 = arith.constant 0.000000e+00 : f32
    %38 = vector.broadcast %cst_47 : f32 to vector<32x128xf32>
    %c0_48 = arith.constant 0 : index
    %c0_49 = arith.constant 0 : index
    %c0_50 = arith.constant 0 : index
    %39 = vector.load %arg8[%c0_48, %c0_49, %c0_50] : memref<2x18x128xf32, #tpu.memory_space<vmem>>, vector<2x16x128xf32>
    %40 = vector.shape_cast %39 : vector<2x16x128xf32> to vector<32x128xf32>
    %41 = arith.truncf %40 : vector<32x128xf32> to vector<32x128xbf16>
    %c0_51 = arith.constant 0 : index
    %c0_52 = arith.constant 0 : index
    %c0_53 = arith.constant 0 : index
    %c0_54 = arith.constant 0 : index
    %42 = vector.load %arg3[%c0_51, %c0_52, %c0_53, %c0_54] : memref<1x3x128x128xbf16, #tpu.memory_space<vmem>>, vector<1x1x128x128xbf16>
    %43 = vector.shape_cast %42 : vector<1x1x128x128xbf16> to vector<128x128xbf16>
    %cst_55 = arith.constant dense<0.000000e+00> : vector<32x128xf32>
    %44 = tpu.matmul %41, %43, %cst_55 {dimension_numbers = #tpu.dot_dimension_numbers<[1], [0], [0], [1], [0, 0, 1, 1], [], []>} : vector<32x128xbf16>, vector<128x128xbf16>, vector<32x128xf32> -> vector<32x128xf32>
    %45 = arith.addf %38, %44 : vector<32x128xf32>
    %c0_56 = arith.constant 0 : index
    %c1_57 = arith.constant 1 : index
    %c0_58 = arith.constant 0 : index
    %46 = vector.load %arg8[%c0_56, %c1_57, %c0_58] : memref<2x18x128xf32, #tpu.memory_space<vmem>>, vector<2x16x128xf32>
    %47 = vector.shape_cast %46 : vector<2x16x128xf32> to vector<32x128xf32>
    %48 = arith.truncf %47 : vector<32x128xf32> to vector<32x128xbf16>
    %c0_59 = arith.constant 0 : index
    %c1_60 = arith.constant 1 : index
    %c0_61 = arith.constant 0 : index
    %c0_62 = arith.constant 0 : index
    %49 = vector.load %arg3[%c0_59, %c1_60, %c0_61, %c0_62] : memref<1x3x128x128xbf16, #tpu.memory_space<vmem>>, vector<1x1x128x128xbf16>
    %50 = vector.shape_cast %49 : vector<1x1x128x128xbf16> to vector<128x128xbf16>
    %cst_63 = arith.constant dense<0.000000e+00> : vector<32x128xf32>
    %51 = tpu.matmul %48, %50, %cst_63 {dimension_numbers = #tpu.dot_dimension_numbers<[1], [0], [0], [1], [0, 0, 1, 1], [], []>} : vector<32x128xbf16>, vector<128x128xbf16>, vector<32x128xf32> -> vector<32x128xf32>
    %52 = arith.addf %45, %51 : vector<32x128xf32>
    %c0_64 = arith.constant 0 : index
    %c2_65 = arith.constant 2 : index
    %c0_66 = arith.constant 0 : index
    %53 = vector.load %arg8[%c0_64, %c2_65, %c0_66] : memref<2x18x128xf32, #tpu.memory_space<vmem>>, vector<2x16x128xf32>
    %54 = vector.shape_cast %53 : vector<2x16x128xf32> to vector<32x128xf32>
    %55 = arith.truncf %54 : vector<32x128xf32> to vector<32x128xbf16>
    %c0_67 = arith.constant 0 : index
    %c2_68 = arith.constant 2 : index
    %c0_69 = arith.constant 0 : index
    %c0_70 = arith.constant 0 : index
    %56 = vector.load %arg3[%c0_67, %c2_68, %c0_69, %c0_70] : memref<1x3x128x128xbf16, #tpu.memory_space<vmem>>, vector<1x1x128x128xbf16>
    %57 = vector.shape_cast %56 : vector<1x1x128x128xbf16> to vector<128x128xbf16>
    %cst_71 = arith.constant dense<0.000000e+00> : vector<32x128xf32>
    %58 = tpu.matmul %55, %57, %cst_71 {dimension_numbers = #tpu.dot_dimension_numbers<[1], [0], [0], [1], [0, 0, 1, 1], [], []>} : vector<32x128xbf16>, vector<128x128xbf16>, vector<32x128xf32> -> vector<32x128xf32>
    %59 = arith.addf %52, %58 : vector<32x128xf32>
    %c0_72 = arith.constant 0 : index
    %c0_73 = arith.constant 0 : index
    %c0_74 = arith.constant 0 : index
    %60 = vector.load %arg5[%c0_72, %c0_73, %c0_74] : memref<1x1x128xf32, #tpu.memory_space<vmem>>, vector<1x1x128xf32>
    %61 = vector.shape_cast %60 : vector<1x1x128xf32> to vector<1x128xf32>
    %62 = vector.broadcast %61 : vector<1x128xf32> to vector<32x128xf32>
    %63 = arith.addf %59, %62 : vector<32x128xf32>
    %64 = vector.shape_cast %1 : vector<2x16x128xf32> to vector<32x128xf32>
    %65 = arith.addf %63, %64 : vector<32x128xf32>
    %cst_75 = arith.constant 0.000000e+00 : f32
    %66 = vector.broadcast %cst_75 : f32 to vector<32x128xf32>
    %67 = arith.maximumf %65, %66 : vector<32x128xf32>
    %68 = vector.shape_cast %67 : vector<32x128xf32> to vector<2x16x128xf32>
    %c0_76 = arith.constant 0 : index
    %c0_77 = arith.constant 0 : index
    %c0_78 = arith.constant 0 : index
    %c0_79 = arith.constant 0 : index
    %69 = vector.load %arg6[%c0_76, %c0_77, %c0_78, %c0_79] : memref<1x2x16x128xf32, #tpu.memory_space<vmem>>, vector<1x2x16x128xf32>
    %70 = vector.shape_cast %69 : vector<1x2x16x128xf32> to vector<2x16x128xf32>
    %71 = vector.shape_cast %68 : vector<2x16x128xf32> to vector<1x2x16x128xf32>
    tpu.vector_store %arg6[%c0_76, %c0_77, %c0_78, %c0_79], %71 {strides = array<i32>} : memref<1x2x16x128xf32, #tpu.memory_space<vmem>>, vector<1x2x16x128xf32>,
    return
  }
  func.func @transform_0(%arg0: i32) -> (i32, i32, i32, i32) {
    %c0_i32 = arith.constant 0 : i32
    %c0_i32_0 = arith.constant 0 : i32
    %c0_i32_1 = arith.constant 0 : i32
    %c0_i32_2 = arith.constant 0 : i32
    return %arg0, %c0_i32, %c0_i32_0, %c0_i32_1 : i32, i32, i32, i32
  }
  func.func @transform_1(%arg0: i32) -> (i32, i32, i32, i32) {
    %c0_i32 = arith.constant 0 : i32
    %c0_i32_0 = arith.constant 0 : i32
    %c0_i32_1 = arith.constant 0 : i32
    %c0_i32_2 = arith.constant 0 : i32
    return %arg0, %c0_i32, %c0_i32_0, %c0_i32_1 : i32, i32, i32, i32
  }
  func.func @transform_2(%arg0: i32) -> (i32, i32, i32, i32) {
    %c0_i32 = arith.constant 0 : i32
    %c0_i32_0 = arith.constant 0 : i32
    %c0_i32_1 = arith.constant 0 : i32
    %c0_i32_2 = arith.constant 0 : i32
    return %arg0, %c0_i32, %c0_i32_0, %c0_i32_1 : i32, i32, i32, i32
  }
  func.func @transform_3(%arg0: i32) -> (i32, i32, i32) {
    %c0_i32 = arith.constant 0 : i32
    %c0_i32_0 = arith.constant 0 : i32
    %c0_i32_1 = arith.constant 0 : i32
    return %arg0, %c0_i32, %c0_i32_0 : i32, i32, i32
  }
  func.func @transform_4(%arg0: i32) -> (i32, i32, i32) {
    %c0_i32 = arith.constant 0 : i32
    %c0_i32_0 = arith.constant 0 : i32
    %c0_i32_1 = arith.constant 0 : i32
    return %arg0, %c0_i32, %c0_i32_0 : i32, i32, i32
  }
  func.func @transform_5(%arg0: i32) -> (i32, i32, i32, i32) {
    %c0_i32 = arith.constant 0 : i32
    %c0_i32_0 = arith.constant 0 : i32
    %c0_i32_1 = arith.constant 0 : i32
    %c0_i32_2 = arith.constant 0 : i32
    return %arg0, %c0_i32, %c0_i32_0, %c0_i32_1 : i32, i32, i32, i32
  }
}

</mosaic_0001>

<bundles_post_ra>
// kernel: multichannel_resnet_basic_block.1
= control target key start
LH: loop header
LB: loop body
LE: loop exit
PB: predicated region body
PF: predicated region fallthrough
CT: control target
= control target key end

     0   :  { %s1597_s18 = smov 0   ;;  %s1712_s0 = inlined_call_operand.vmem [shape: f32[2,2,16,128], index: 0, kind: input, shape index: {}]   ;;  %s1713_s1 = inlined_call_operand.vmem [shape: bf16[2,3,128,128], index: 1, kind: input, shape index: {}]   ;;  %s1714_s2 = inlined_call_operand.vmem [shape: bf16[2,3,128,128], index: 2, kind: input, shape index: {}]   ;;  %s1715_s3 = inlined_call_operand.vmem [shape: f32[2,1,128], index: 3, kind: input, shape index: {}]   ;;  %s1716_s4 = inlined_call_operand.vmem [shape: f32[2,1,128], index: 4, kind: input, shape index: {}]   ;;  %s1717_s5 = inlined_call_operand.vmem [shape: f32[2,2,16,128], index: 5, kind: output, shape index: {}]  }
   0x1 LB: > { %s1175_s19 = sadd.s32 4294967295, %s1564_s18   ;;  %p1179_p0 = scmp.ge.s32.totalorder %s1564_s18, 1  ;;  %s1564_s18 = sphi %s1597_s18, %s15_s18  }
   0x2   : > { %p223_p1 = scmp.lt.s32.totalorder %s1564_s18, 3 }
   0x4   : > { %p224_p2 = pnand %p1179_p0, %p223_p1 }
   0x5   : > { %p267_p3 = scmp.lt.s32.totalorder (!%p224_p2), %s1175_s19, 1  ;;  %v1566_v0 = vmov (!%p224_p2), 0.0  }
   0x6   : > { %227 = sbr.rel (%p224_p2) target bundleno = 622 (0x26e), region = 40  ;;  %298 = vst [vmem:[#allocation2] sm:$0x1] (!%p224_p2), %v1566_v0  ;;  %299 = vst [vmem:[#allocation2 + $0x18] sm:$0x1] (!%p224_p2), %v1566_v0 }
   0x7   : > { %300 = vst [vmem:[#allocation2 + $0x11] sm:$0x1] (!%p224_p2), %v1566_v0  ;;  %301 = vst [vmem:[#allocation2 + $0x29] sm:$0x1] (!%p224_p2), %v1566_v0 }
   0x8   : > { %684 = vst [vmem:[#allocation3] sm:$0x1] (!%p224_p2), %v1566_v0  ;;  %685 = vst [vmem:[#allocation3 + $0x18] sm:$0x1] (!%p224_p2), %v1566_v0 }
   0x9   : > { %686 = vst [vmem:[#allocation3 + $0x11] sm:$0x1] (!%p224_p2), %v1566_v0  ;;  %687 = vst [vmem:[#allocation3 + $0x29] sm:$0x1] (!%p224_p2), %v1566_v0 }
   0xd   : > { %s1719_s19 = smov (!%p267_p3, %s1175_s19), 1 }
   0xe   : > { %s1500_s20 = smul.u32 192, %s1719_s19  ;;  %s1302_s21 = sshll.u32 %s1719_s19, 5 }
   0xf   : > { %s271_s24 = scalar_lea.vmem %s1712_s0, %s1302_s21  ;;  %s284_s8 = scalar_lea.vmem %s1715_s3, %s1719_s19 }
  0x10   : > { %s1619_s27 = scalar_lea.vmem %s1713_s1, %s1500_s20  ;;  %v1621_v1 = vld [vmem:[%s271_s24] sm:$0xff]  ;;  %v1623_v2 = vld [vmem:[%s271_s24 + $0x8] sm:$0xff]  ;;  %v1625_v3 = vld [vmem:[%s271_s24 + $0x10] sm:$0xff]  ;;  %s1648_s30 = scalar_lea.vmem %s1714_s2, %s1500_s20 }
  0x11   : > { %v1510_v4 = vld [vmem:[%s1619_s27 + $0x40] sm:$0xff]   ;;  %302 = vst [vmem:[#allocation2 + $0x1] sm:$0xff] %v1621_v1  ;;  %303 = vst [vmem:[#allocation2 + $0x9] sm:$0xff] %v1623_v2  ;;  %v332_v5 = vpack.c.bf16 %v1623_v2, %v1621_v1  ;;  %v1511_v6 = vld [vmem:[%s1619_s27 + $0x48] sm:$0xff]   ;;  %s287_s11 = scalar_lea.vmem %s1716_s4, %s1719_s19  ;;  %s292_s14 = scalar_lea.vmem %s1717_s5, %s1302_s21 }
  0x12   : > { %304 = vst [vmem:[#allocation2 + $0x19] sm:$0xff] %v1625_v3  ;;  %1364 = vmatprep.subr.bf16.mxu0 %v1510_v4  ;;  %v1512_v7 = vld [vmem:[%s1619_s27 + $0x50] sm:$0xff]   ;;  %v1513_v8 = vld [vmem:[%s1619_s27 + $0x58] sm:$0xff]   ;;  %v1514_v10 = vld [vmem:[%s1619_s27 + $0x60] sm:$0xff]  }
  0x13   : > { %1380 = vmatprep.mubr.bf16.mxu0 %v332_v5  ;;  %1365 = vmatpush3.bf16.msra.mxu0 %v1510_v4  ;;  %v1636_v9 = vld [vmem:[%s271_s24 + $0x18] sm:$0xff]  ;;  %v1515_v11 = vld [vmem:[%s1619_s27 + $0x68] sm:$0xff]   ;;  %v1516_v12 = vld [vmem:[%s1619_s27 + $0x70] sm:$0xff]  }
  0x14   : > { %1366 = vmatprep.subr.bf16.mxu0 %v1511_v6  ;;  %305 = vst [vmem:[#allocation2 + $0x21] sm:$0xff] %v1636_v9  ;;  %v1517_v13 = vld [vmem:[%s1619_s27 + $0x78] sm:$0xff]   ;;  %v1518_v14 = vld [vmem:[%s1619_s27] sm:$0xff]   ;;  %v1535_v18 = vld [vmem:[%s1648_s30 + $0x48] sm:$0xff]   ;;  %v333_v19 = vpack.c.bf16 %v1636_v9, %v1625_v3 }
  0x15   : > { %v1534_v17 = vld [vmem:[%s1648_s30 + $0x40] sm:$0xff]   ;;  %v1519_v20 = vld [vmem:[%s1619_s27 + $0x8] sm:$0xff]   ;;  %v1536_v21 = vld [vmem:[%s1648_s30 + $0x50] sm:$0xff]  }
  0x16   : > { %1424 = vmatprep.subr.bf16.mxu1 %v1534_v17  ;;  %v1537_v23 = vld [vmem:[%s1648_s30 + $0x58] sm:$0xff]   ;;  %v1520_v24 = vld [vmem:[%s1619_s27 + $0x10] sm:$0xff]   ;;  %v1522_v26 = vld [vmem:[%s1619_s27 + $0x20] sm:$0xff]  }
  0x17   : > { %1367 = vmatpush3.bf16.msra.mxu0 %v1511_v6  ;;  %1425 = vmatpush3.bf16.msra.mxu1 %v1534_v17  ;;  %v1521_v25 = vld [vmem:[%s1619_s27 + $0x18] sm:$0xff]   ;;  %v1523_v27 = vld [vmem:[%s1619_s27 + $0x28] sm:$0xff]   ;;  %v1524_v28 = vld [vmem:[%s1619_s27 + $0x30] sm:$0xff]  }
  0x18   : > { %1368 = vmatprep.subr.bf16.mxu0 %v1512_v7  ;;  %v306_v15 = vld [vmem:[#allocation2] sm:$0xff]  ;;  %v307_v16 = vld [vmem:[#allocation2 + $0x8] sm:$0xff]  ;;  %1426 = vmatprep.subr.bf16.mxu1 %v1535_v18  ;;  %v1525_v29 = vld [vmem:[%s1619_s27 + $0x38] sm:$0xff]  }
  0x19   : > { %v310_v22 = vpack.c.bf16 %v307_v16, %v306_v15  ;;  %v308_v30 = vld [vmem:[#allocation2 + $0x18] sm:$0xff]  ;;  %v1526_v32 = vld [vmem:[%s1619_s27 + $0x80] sm:$0xff]   ;;  %v546_v34 = vld [vmem:[#allocation2 + $0xa] sm:$0xff] }
  0x1a   : > { %v545_v33 = vld [vmem:[#allocation2 + $0x2] sm:$0xff]  ;;  %v1528_v38 = vld [vmem:[%s1619_s27 + $0x90] sm:$0xff]   ;;  %v1529_v39 = vld [vmem:[%s1619_s27 + $0x98] sm:$0xff]  }
  0x1b   : > { %1369 = vmatpush3.bf16.msra.mxu0 %v1512_v7  ;;  %1427 = vmatpush3.bf16.msra.mxu1 %v1535_v18  ;;  %v309_v31 = vld [vmem:[#allocation2 + $0x20] sm:$0xff]  ;;  %v549_v36 = vpack.c.bf16 %v546_v34, %v545_v33  ;;  %v1527_v37 = vld [vmem:[%s1619_s27 + $0x88] sm:$0xff]   ;;  %v1532_v42 = vld [vmem:[%s1619_s27 + $0xb0] sm:$0xff]  }
  0x1c   : > { %1370 = vmatprep.subr.bf16.mxu0 %v1513_v8  ;;  %1428 = vmatprep.subr.bf16.mxu1 %v1536_v21  ;;  %v311_v35 = vpack.c.bf16 %v309_v31, %v308_v30  ;;  %v1530_v40 = vld [vmem:[%s1619_s27 + $0xa0] sm:$0xff]   ;;  %v1531_v41 = vld [vmem:[%s1619_s27 + $0xa8] sm:$0xff]   ;;  %v1533_v43 = vld [vmem:[%s1619_s27 + $0xb8] sm:$0xff]  }
  0x1d   : > { %v547_v44 = vld [vmem:[#allocation2 + $0x1a] sm:$0xff]  ;;  %v548_v45 = vld [vmem:[#allocation2 + $0x22] sm:$0xff]  ;;  %v1540_v49 = vld [vmem:[%s1648_s30 + $0x70] sm:$0xff]  }
  0x1e   : > { %v550_v46 = vpack.c.bf16 %v548_v45, %v547_v44  ;;  %v1538_v47 = vld [vmem:[%s1648_s30 + $0x60] sm:$0xff]   ;;  %v1539_v48 = vld [vmem:[%s1648_s30 + $0x68] sm:$0xff]   ;;  %v1541_v50 = vld [vmem:[%s1648_s30 + $0x78] sm:$0xff]  }
  0x1f   : > { %1371 = vmatpush3.bf16.msra.mxu0 %v1513_v8  ;;  %1429 = vmatpush3.bf16.msra.mxu1 %v1536_v21  ;;  %v1542_v51 = vld [vmem:[%s1648_s30] sm:$0xff]   ;;  %v1543_v6 = vld [vmem:[%s1648_s30 + $0x8] sm:$0xff]   ;;  %v1544_v7 = vld [vmem:[%s1648_s30 + $0x10] sm:$0xff]  }
  0x20   : > { %1372 = vmatprep.subr.bf16.mxu0 %v1514_v10  ;;  %1430 = vmatprep.subr.bf16.mxu1 %v1537_v23  ;;  %v1242_v52 = vld [vmem:[%s284_s8] ss:$0 sm:$0xff]  ;;  %v1548_v15 = vld [vmem:[%s1648_s30 + $0x30] sm:$0xff]   ;;  %v1549_v16 = vld [vmem:[%s1648_s30 + $0x38] sm:$0xff]  }
  0x21   : > { %v1550_v17 = vld [vmem:[%s1648_s30 + $0x80] sm:$0xff]   ;;  %v1557_v30 = vld [vmem:[%s1648_s30 + $0xb8] sm:$0xff]  }
  0x22   : > { %v1299_v34 = vld [vmem:[%s287_s11] ss:$0 sm:$0xff] }
  0x23   : > { %1373 = vmatpush3.bf16.msra.mxu0 %v1514_v10  ;;  %1431 = vmatpush3.bf16.msra.mxu1 %v1537_v23  ;;  %v1551_v23 = vld [vmem:[%s1648_s30 + $0x88] sm:$0xff]  }
  0x24   : > { %1374 = vmatprep.subr.bf16.mxu0 %v1515_v11  ;;  %1432 = vmatprep.subr.bf16.mxu1 %v1538_v47 }
  0x27   : > { %1375 = vmatpush3.bf16.msra.mxu0 %v1515_v11  ;;  %1433 = vmatpush3.bf16.msra.mxu1 %v1538_v47 }
  0x28   : > { %1376 = vmatprep.subr.bf16.mxu0 %v1516_v12  ;;  %1434 = vmatprep.subr.bf16.mxu1 %v1539_v48 }
  0x2b   : > { %1377 = vmatpush3.bf16.msra.mxu0 %v1516_v12  ;;  %1435 = vmatpush3.bf16.msra.mxu1 %v1539_v48  ;;  %v1545_v12 = vld [vmem:[%s1648_s30 + $0x18] sm:$0xff]  }
  0x2c   : > { %1378 = vmatprep.subr.bf16.mxu0 %v1517_v13  ;;  %1436 = vmatprep.subr.bf16.mxu1 %v1540_v49 }
  0x2f   : > { %1379 = vmatpush3.bf16.msra.mxu0 %v1517_v13  ;;  %1437 = vmatpush3.bf16.msra.mxu1 %v1540_v49  ;;  %v1546_v13 = vld [vmem:[%s1648_s30 + $0x20] sm:$0xff]  }
  0x30   : > { %1384 = vmatprep.subr.bf16.mxu0 %v1518_v14  ;;  %1438 = vmatprep.subr.bf16.mxu1 %v1541_v50 }
  0x32   : > { %1381 = vmatmul.mubr.bf16.vlgmr.msra.gmra.mrb[0].mxu0 %v333_v19 }
  0x33   : > { %1385 = vmatpush3.bf16.msra.mxu0 %v1518_v14  ;;  %1400 = vmatprep.mubr.bf16.mxu0 %v310_v22  ;;  %v1547_v14 = vld [vmem:[%s1648_s30 + $0x28] sm:$0xff]  }
  0x34   : > { %1386 = vmatprep.subr.bf16.mxu0 %v1519_v20  ;;  %1439 = vmatpush3.bf16.msra.mxu1 %v1541_v50 }
  0x35   : > { %1444 = vmatprep.subr.bf16.mxu1 %v1542_v51 }
  0x37   : > { %1387 = vmatpush3.bf16.msra.mxu0 %v1519_v20 }
  0x38   : > { %1388 = vmatprep.subr.bf16.mxu0 %v1520_v24 }
  0x3b   : > { %1389 = vmatpush3.bf16.msra.mxu0 %v1520_v24 }
  0x3c   : > { %1390 = vmatprep.subr.bf16.mxu0 %v1521_v25 }
  0x3f   : > { %1391 = vmatpush3.bf16.msra.mxu0 %v1521_v25  ;;  %v1552_v25 = vld [vmem:[%s1648_s30 + $0x90] sm:$0xff]  }
  0x40   : > { %1392 = vmatprep.subr.bf16.mxu0 %v1522_v26 }
  0x43   : > { %1393 = vmatpush3.bf16.msra.mxu0 %v1522_v26  ;;  %v1553_v26 = vld [vmem:[%s1648_s30 + $0x98] sm:$0xff]  }
  0x44   : > { %1394 = vmatprep.subr.bf16.mxu0 %v1523_v27 }
  0x47   : > { %1395 = vmatpush3.bf16.msra.mxu0 %v1523_v27  ;;  %v1554_v27 = vld [vmem:[%s1648_s30 + $0xa0] sm:$0xff]  }
  0x48   : > { %1396 = vmatprep.subr.bf16.mxu0 %v1524_v28 }
  0x4b   : > { %1397 = vmatpush3.bf16.msra.mxu0 %v1524_v28  ;;  %v1555_v28 = vld [vmem:[%s1648_s30 + $0xa8] sm:$0xff]  }
  0x4c   : > { %1398 = vmatprep.subr.bf16.mxu0 %v1525_v29 }
  0x4f   : > { %1399 = vmatpush3.bf16.msra.mxu0 %v1525_v29  ;;  %v1556_v29 = vld [vmem:[%s1648_s30 + $0xb0] sm:$0xff]  }
  0x50   : > { %1404 = vmatprep.subr.bf16.mxu0 %v1526_v32 }
  0x52   : > { %1401 = vmatmul.mubr.bf16.vlgmr.msra.gmra.mrb[0].mxu0 %v311_v35 }
  0x53   : > { %1405 = vmatpush3.bf16.msra.mxu0 %v1526_v32  ;;  %1420 = vmatprep.mubr.bf16.mxu0 %v549_v36 }
  0x54   : > { %1406 = vmatprep.subr.bf16.mxu0 %v1527_v37 }
  0x57   : > { %1407 = vmatpush3.bf16.msra.mxu0 %v1527_v37 }
  0x58   : > { %1408 = vmatprep.subr.bf16.mxu0 %v1528_v38 }
  0x5b   : > { %1409 = vmatpush3.bf16.msra.mxu0 %v1528_v38 }
  0x5c   : > { %1410 = vmatprep.subr.bf16.mxu0 %v1529_v39 }
  0x5f   : > { %1411 = vmatpush3.bf16.msra.mxu0 %v1529_v39 }
  0x60   : > { %1412 = vmatprep.subr.bf16.mxu0 %v1530_v40 }
  0x63   : > { %1413 = vmatpush3.bf16.msra.mxu0 %v1530_v40 }
  0x64   : > { %1414 = vmatprep.subr.bf16.mxu0 %v1531_v41 }
  0x67   : > { %1415 = vmatpush3.bf16.msra.mxu0 %v1531_v41 }
  0x68   : > { %1416 = vmatprep.subr.bf16.mxu0 %v1532_v42 }
  0x6b   : > { %1417 = vmatpush3.bf16.msra.mxu0 %v1532_v42 }
  0x6c   : > { %1418 = vmatprep.subr.bf16.mxu0 %v1533_v43 }
  0x6f   : > { %1419 = vmatpush3.bf16.msra.mxu0 %v1533_v43 }
  0x72   : > { %1421 = vmatmul.mubr.bf16.vlgmr.msra.gmra.mrb[0].mxu0 %v550_v46 }
 0x145   : > { %v1422_v53 = vpop.f32.mrb[0].mxu0 }
 0x146   : > { %v678_v54 = vadd.f32 %v1422_v53, %v1242_v52  ;;  %v650_v55 = vpop.f32.mrb[1].mxu0 }
 0x147   : > { %v676_v56 = vadd.f32 %v1242_v52, %v650_v55  ;;  %v1423_v57 = vpop.f32.mrb[2].mxu0 }
 0x148   : > { %v682_v58 = vmax.f32 %v678_v54, 0.0  ;;  %v679_v59 = vadd.f32 %v1423_v57, %v1242_v52  ;;  %v653_v60 = vpop.f32.mrb[3].mxu0 }
 0x149   : > { %v680_v61 = vmax.f32 %v676_v56, 0.0  ;;  %v677_v62 = vadd.f32 %v1242_v52, %v653_v60 }
 0x14a   : > { %690 = vst [vmem:[#allocation3 + $0x19] sm:$0xff] %v682_v58  ;;  %v683_v63 = vmax.f32 %v679_v59, 0.0 }
 0x14b   : > { %688 = vst [vmem:[#allocation3 + $0x1] sm:$0xff] %v680_v61  ;;  %v681_v0 = vmax.f32 %v677_v62, 0.0 }
 0x14c   : > { %691 = vst [vmem:[#allocation3 + $0x21] sm:$0xff] %v683_v63  ;;  %v719_v4 = vpack.c.bf16 %v683_v63, %v682_v58 }
 0x14d   : > { %689 = vst [vmem:[#allocation3 + $0x9] sm:$0xff] %v681_v0  ;;  %v718_v5 = vpack.c.bf16 %v681_v0, %v680_v61 }
 0x14f   : > { %1440 = vmatprep.mubr.bf16.mxu1 %v718_v5 }
 0x150   : > { %1441 = vmatmul.mubr.bf16.vlgmr.msra.gmra.mrb[0].mxu1 %v719_v4 }
 0x151   : > { %1445 = vmatpush3.bf16.msra.mxu1 %v1542_v51  ;;  %v694_v21 = vld [vmem:[#allocation3 + $0x18] sm:$0xff] }
 0x152   : > { %1446 = vmatprep.subr.bf16.mxu1 %v1543_v6  ;;  %v692_v8 = vld [vmem:[#allocation3] sm:$0xff] }
 0x153   : > { %v695_v18 = vld [vmem:[#allocation3 + $0x20] sm:$0xff] }
 0x154   : > { %v693_v10 = vld [vmem:[#allocation3 + $0x8] sm:$0xff]  ;;  %v697_v22 = vpack.c.bf16 %v695_v18, %v694_v21  ;;  %v933_v31 = vld [vmem:[#allocation3 + $0x1a] sm:$0xff] }
 0x155   : > { %v696_v11 = vpack.c.bf16 %v693_v10, %v692_v8  ;;  %1447 = vmatpush3.bf16.msra.mxu1 %v1543_v6  ;;  %v931_v19 = vld [vmem:[#allocation3 + $0x2] sm:$0xff]  ;;  %v932_v20 = vld [vmem:[#allocation3 + $0xa] sm:$0xff] }
 0x156   : > { %1448 = vmatprep.subr.bf16.mxu1 %v1544_v7  ;;  %v935_v24 = vpack.c.bf16 %v932_v20, %v931_v19  ;;  %v934_v32 = vld [vmem:[#allocation3 + $0x22] sm:$0xff] }
 0x157   : > { %1460 = vmatprep.mubr.bf16.mxu1 %v696_v11  ;;  %v936_v33 = vpack.c.bf16 %v934_v32, %v933_v31 }
 0x159   : > { %1449 = vmatpush3.bf16.msra.mxu1 %v1544_v7 }
 0x15a   : > { %1450 = vmatprep.subr.bf16.mxu1 %v1545_v12 }
 0x15d   : > { %1451 = vmatpush3.bf16.msra.mxu1 %v1545_v12 }
 0x15e   : > { %1452 = vmatprep.subr.bf16.mxu1 %v1546_v13 }
 0x161   : > { %1453 = vmatpush3.bf16.msra.mxu1 %v1546_v13 }
 0x162   : > { %1454 = vmatprep.subr.bf16.mxu1 %v1547_v14 }
 0x165   : > { %1455 = vmatpush3.bf16.msra.mxu1 %v1547_v14 }
 0x166   : > { %1456 = vmatprep.subr.bf16.mxu1 %v1548_v15 }
 0x169   : > { %1457 = vmatpush3.bf16.msra.mxu1 %v1548_v15 }
 0x16a   : > { %1458 = vmatprep.subr.bf16.mxu1 %v1549_v16 }
 0x16d   : > { %1459 = vmatpush3.bf16.msra.mxu1 %v1549_v16 }
 0x16e   : > { %1464 = vmatprep.subr.bf16.mxu1 %v1550_v17 }
 0x170   : > { %1461 = vmatmul.mubr.bf16.vlgmr.msra.gmra.mrb[0].mxu1 %v697_v22 }
 0x171   : > { %1465 = vmatpush3.bf16.msra.mxu1 %v1550_v17  ;;  %1480 = vmatprep.mubr.bf16.mxu1 %v935_v24 }
 0x172   : > { %1466 = vmatprep.subr.bf16.mxu1 %v1551_v23 }
 0x175   : > { %1467 = vmatpush3.bf16.msra.mxu1 %v1551_v23 }
 0x176   : > { %1468 = vmatprep.subr.bf16.mxu1 %v1552_v25 }
 0x179   : > { %1469 = vmatpush3.bf16.msra.mxu1 %v1552_v25 }
 0x17a   : > { %1470 = vmatprep.subr.bf16.mxu1 %v1553_v26 }
 0x17d   : > { %1471 = vmatpush3.bf16.msra.mxu1 %v1553_v26 }
 0x17e   : > { %1472 = vmatprep.subr.bf16.mxu1 %v1554_v27 }
 0x181   : > { %1473 = vmatpush3.bf16.msra.mxu1 %v1554_v27 }
 0x182   : > { %1474 = vmatprep.subr.bf16.mxu1 %v1555_v28 }
 0x185   : > { %1475 = vmatpush3.bf16.msra.mxu1 %v1555_v28 }
 0x186   : > { %1476 = vmatprep.subr.bf16.mxu1 %v1556_v29 }
 0x189   : > { %1477 = vmatpush3.bf16.msra.mxu1 %v1556_v29 }
 0x18a   : > { %1478 = vmatprep.subr.bf16.mxu1 %v1557_v30 }
 0x18d   : > { %1479 = vmatpush3.bf16.msra.mxu1 %v1557_v30 }
 0x190   : > { %1481 = vmatmul.mubr.bf16.vlgmr.msra.gmra.mrb[0].mxu1 %v936_v33 }
 0x263   : > { %v1482_v35 = vpop.f32.mrb[0].mxu1 }
 0x264   : > { %v1064_v36 = vadd.f32 %v1482_v35, %v1299_v34  ;;  %v1036_v37 = vpop.f32.mrb[1].mxu1 }
 0x265   : > { %v1062_v38 = vadd.f32 %v1299_v34, %v1036_v37  ;;  %v1483_v39 = vpop.f32.mrb[2].mxu1 }
 0x266   : > { %v1068_v40 = vadd.f32 %v1064_v36, %v1625_v3  ;;  %v1065_v41 = vadd.f32 %v1483_v39, %v1299_v34  ;;  %v1039_v42 = vpop.f32.mrb[3].mxu1 }
 0x267   : > { %v1066_v43 = vadd.f32 %v1062_v38, %v1621_v1  ;;  %v1063_v44 = vadd.f32 %v1299_v34, %v1039_v42 }
 0x268   : > { %v1072_v45 = vmax.f32 %v1068_v40, 0.0  ;;  %v1069_v46 = vadd.f32 %v1065_v41, %v1636_v9 }
 0x269   : > { %v1070_v47 = vmax.f32 %v1066_v43, 0.0  ;;  %v1067_v48 = vadd.f32 %v1063_v44, %v1623_v2 }
 0x26a   : > { %1076 = vst [vmem:[%s292_s14 + $0x10] sm:$0xff] %v1072_v45  ;;  %v1073_v49 = vmax.f32 %v1069_v46, 0.0 }
 0x26b   : > { %1074 = vst [vmem:[%s292_s14] sm:$0xff] %v1070_v47  ;;  %v1071_v3 = vmax.f32 %v1067_v48, 0.0 }
 0x26c   : > { %1077 = vst [vmem:[%s292_s14 + $0x18] sm:$0xff] %v1073_v49 }
 0x26d   : > { %1075 = vst [vmem:[%s292_s14 + $0x8] sm:$0xff] %v1071_v3 }
 0x26e PF: > { %s15_s18 = sadd.s32 1, %s1564_s18  }
 0x26f   : > { %p12_p4 = scmp.ge.s32.totalorder %s15_s18, 4  }
 0x271   :  { %14 = sbr.rel (!%p12_p4) target bundleno = 1 (0x1), region = 86 }

</bundles_post_ra>
